<compile_context>
chip_gen: v7x
topology: tpu7x:2x2x1
jax: 0.10.0
libtpu: 0.0.40
codegen_flags: <defaults>
</compile_context>

<pallas_src>
import functools

import jax
import jax.numpy as jnp
from jax.experimental import pallas as pl
from jax.experimental.pallas import tpu as pltpu

_LANE = 128          # TPU lane width (last-dim tiling unit)
_COL_TILE = 512      # preferred class-dim tile when num_classes is large
_F32_EPS_SQ = 1e-24  # F.normalize eps=1e-12 on the norm -> 1e-24 on norm^2


def _round_up(n, m):
    return ((n + m - 1) // m) * m


def _cdiv(a, b):
    return -(-a // b)


def _row_align(dtype):
    # Sublane packing: 8 rows for 32-bit, 16 for 16-bit, 32 for 8-bit dtypes.
    return 8 * (4 // jnp.dtype(dtype).itemsize)


def _vmem_limit_bytes():
    """Generation-aware scoped-VMEM limit (v5e/v6e: ~96 MiB, v7x: ~48 MiB)."""
    try:
        cap = int(pltpu.get_tpu_info().vmem_capacity_bytes)
    except Exception:  # pragma: no cover - conservative fallback
        cap = 64 * 1024 * 1024
    return int(min(cap * 3 // 4, 96 * 1024 * 1024))


def prepare_weight(weight, matmul_dtype=None):
    """(C, D) nn.Linear weight -> (D, C_pad) lane-dense, padded to 128 only.

    Call once outside the step function to avoid re-doing the HBM
    transpose/pad every forward call.
    """
    c, d = weight.shape
    if matmul_dtype is not None:
        weight = weight.astype(matmul_dtype)
    c_pad = _round_up(c, _LANE)
    wt = jnp.zeros((d, c_pad), dtype=weight.dtype)
    return wt.at[:, :c].set(weight.T)


def _choose_tn(c_pad, d, w_itemsize, vmem_limit):
    """Largest class tile dividing c_pad whose double-buffered weight tile
    stays under ~1/3 of the VMEM limit (drops to 256/128 on tight VMEM)."""
    cands = []
    for t in (c_pad, _COL_TILE, 384, 256, 128):
        if t <= c_pad and c_pad % t == 0 and t not in cands:
            cands.append(t)
    for t in cands:
        if 2 * d * t * w_itemsize <= vmem_limit // 3:
            return t
    return cands[-1]


def _choose_block_m(b_al, d, tn, x_dtype, w_dtype, out_dtype, vmem_limit, align):
    """Largest aligned row tile whose double-buffered working set fits the
    generation-aware VMEM budget."""
    xb = jnp.dtype(x_dtype).itemsize
    wb = jnp.dtype(w_dtype).itemsize
    ob = jnp.dtype(out_dtype).itemsize
    fixed = 2 * d * tn * wb + (2 << 20)            # weight buffers + headroom
    per_row = 2 * d * xb + 2 * tn * ob + 4         # x + out tiles (x2) + scale
    avail = max(vmem_limit - fixed, per_row * align)
    bm = (avail // per_row) // align * align
    bm = int(max(align, min(bm, 1024)))
    # Prefer >= 4 row tiles (pipeline overlap; dual-TC sharding on v7x) while
    # keeping row tiles >= 128 rows (or the whole batch when it is smaller).
    target = max(_round_up(_cdiv(b_al, 4), align), min(b_al, 128))
    bm = min(bm, _round_up(target, align), b_al)
    return max(align, bm)


def _classifier_kernel(inv_temp_ref, x_ref, w_ref, o_ref, scale_ref, *,
                       class_axis, hoist_norm, matmul_dtype):
    inv_temp = inv_temp_ref[0]

    def row_scale():
        xf = x_ref[...].astype(jnp.float32)
        sq = jnp.sum(xf * xf, axis=-1, keepdims=True)
        # F.normalize: x / max(||x||, 1e-12) == x * rsqrt(max(||x||^2, 1e-24));
        # folded with 1/temp and applied to the logits AFTER the matmul.
        return jax.lax.rsqrt(jnp.maximum(sq, _F32_EPS_SQ)) * inv_temp

    if hoist_norm:
        # Compute once per row tile (first class tile), reuse for all class tiles.
        @pl.when(pl.program_id(class_axis) == 0)
        def _():
            scale_ref[...] = row_scale()
        scale = scale_ref[...]
    else:
        scale = row_scale()

    x = x_ref[...]
    if matmul_dtype is not None:
        x = x.astype(matmul_dtype)        # weight pre-cast in prepare_weight
    logits = jnp.dot(x, w_ref[...], preferred_element_type=jnp.float32)
    o_ref[...] = (logits * scale).astype(o_ref.dtype)


def res_classifier_mme_forward(x, weight, temp=0.05, *, prepared_weight=None,
                               matmul_dtype=None, block_m=None):
    """x: (B, D) float; weight: (C, D) float (PyTorch nn.Linear layout)."""
    b, d = x.shape
    c = weight.shape[0]
    out_dtype = x.dtype                       # PyTorch preserves input dtype

    wt = (prepare_weight(weight, matmul_dtype)
          if prepared_weight is None else prepared_weight)
    c_pad = wt.shape[1]

    vmem_limit = _vmem_limit_bytes()
    tn = _choose_tn(c_pad, d, jnp.dtype(wt.dtype).itemsize, vmem_limit)
    c_tiles = c_pad // tn

    align = _row_align(x.dtype)
    b_al = _round_up(b, align)
    if block_m is None:
        bm_cap = _choose_block_m(b_al, d, tn, x.dtype, wt.dtype, out_dtype,
                                 vmem_limit, align)
    else:
        bm_cap = max(align, (int(block_m) // align) * align)

    # Batch padding is capped to < align per row tile (no block_m-sized overshoot).
    r_tiles = _cdiv(b_al, bm_cap)
    block_m = _round_up(_cdiv(b_al, r_tiles), align)
    b_pad = r_tiles * block_m
    if b_pad != b:
        x = jnp.pad(x, ((0, b_pad - b), (0, 0)))  # zero rows -> zero logits

    inv_temp = jnp.full((1,), 1.0 / float(temp), dtype=jnp.float32)

    # Grid-order choice from an HBM-traffic model:
    #   A) rows outer / classes inner: x streamed once, weight r_tiles times,
    #      normalization hoisted to the first class tile of each row tile.
    #   B) classes outer / rows inner: weight streamed once, x c_tiles times,
    #      normalization recomputed per tile.
    x_bytes = b_pad * d * jnp.dtype(x.dtype).itemsize
    w_bytes = d * c_pad * jnp.dtype(wt.dtype).itemsize
    traffic_a = x_bytes + r_tiles * w_bytes
    traffic_b = c_tiles * x_bytes + w_bytes
    classes_inner = (c_tiles == 1) or (traffic_a <= traffic_b)

    # TODO(synk): no K-tiling over the feature dim D; extremely wide features
    # with f32 weights may still exceed the per-tile VMEM budget on v7x.
    if classes_inner:
        grid = (r_tiles, c_tiles)
        x_spec = pl.BlockSpec((block_m, d), lambda i, j: (i, 0))
        w_spec = pl.BlockSpec((d, tn), lambda i, j: (0, j))
        o_spec = pl.BlockSpec((block_m, tn), lambda i, j: (i, j))
        dim_sem = ("parallel", "arbitrary")
        class_axis = 1
    else:
        grid = (c_tiles, r_tiles)
        x_spec = pl.BlockSpec((block_m, d), lambda j, i: (i, 0))
        w_spec = pl.BlockSpec((d, tn), lambda j, i: (0, j))
        o_spec = pl.BlockSpec((block_m, tn), lambda j, i: (i, j))
        dim_sem = ("arbitrary", "parallel")
        class_axis = 0

    kernel = functools.partial(
        _classifier_kernel,
        class_axis=class_axis,
        hoist_norm=classes_inner,
        matmul_dtype=matmul_dtype,
    )

    cost = pl.CostEstimate(
        flops=2 * b_pad * d * c_pad,
        transcendentals=b_pad,
        bytes_accessed=(x_bytes + w_bytes
                        + b_pad * c_pad * jnp.dtype(out_dtype).itemsize),
    )

    out = pl.pallas_call(
        kernel,
        out_shape=jax.ShapeDtypeStruct((b_pad, c_pad), out_dtype),
        grid_spec=pltpu.PrefetchScalarGridSpec(
            num_scalar_prefetch=0,
            grid=grid,
            in_specs=[
                # 1/temp scalar in SMEM: no recompilation per temp value.
                pl.BlockSpec(memory_space=pltpu.MemorySpace.SMEM),
                x_spec,
                w_spec,
            ],
            out_specs=o_spec,
            scratch_shapes=[pltpu.VMEM((block_m, 1), jnp.float32)],
        ),
        compiler_params=pltpu.CompilerParams(
            dimension_semantics=dim_sem,
            vmem_limit_bytes=vmem_limit,
        ),
        cost_estimate=cost,
    )(inv_temp, x, wt)

    return out[:b, :c]


if __name__ == "__main__":
    # Small shapes consistent with the module: Linear(input_size -> num_classes).
    batch = 8
    input_size = 256
    num_classes = 12
    temp = 0.05

    key = jax.random.PRNGKey(0)
    kx, kw = jax.random.split(key)

    x = jax.random.normal(kx, (batch, input_size), dtype=jnp.float32)
    # weights_init: normal_(0.0, 0.1), shape (num_classes, input_size), no bias
    weight = 0.1 * jax.random.normal(kw, (num_classes, input_size),
                                     dtype=jnp.float32)

    out = jax.block_until_ready(res_classifier_mme_forward(x, weight, temp=temp))

    # Reference check in plain JAX (same math as the PyTorch forward).
    norm = jnp.maximum(jnp.linalg.norm(x, axis=1, keepdims=True), 1e-12)
    ref = (x / norm) @ weight.T / temp
    assert out.shape == (batch, num_classes)
    assert out.dtype == x.dtype
    err = float(jnp.max(jnp.abs(out - ref)))
    assert jnp.allclose(out, ref, atol=1e-3, rtol=1e-3), err

    print("KERNEL_OK")
</pallas_src>

<mosaic_0001>
module attributes {stable_mosaic.version = 11 : i64} {
  func.func @_classifier_kernel(%arg0: i32, %arg1: i32, %arg2: memref<1xf32, #tpu.memory_space<smem>>, %arg3: memref<8x256xf32, #tpu.memory_space<vmem>>, %arg4: memref<256x128xf32, #tpu.memory_space<vmem>>, %arg5: memref<8x128xf32, #tpu.memory_space<vmem>>, %arg6: memref<8x1xf32, #tpu.memory_space<vmem>>) attributes {dimension_semantics = [#tpu.dimension_semantics<parallel>, #tpu.dimension_semantics<arbitrary>], iteration_bounds = array<i64: 1, 1>, scalar_prefetch = 0 : i64, scratch_operands = 1 : i64, tpu.core_type = #tpu.core_type<tc>, window_params = [{transform_indices = @transform_0, window_bounds = array<i64: 1>}, {transform_indices = @transform_1, window_bounds = array<i64: 8, 256>}, {transform_indices = @transform_2, window_bounds = array<i64: 256, 128>}, {transform_indices = @transform_3, window_bounds = array<i64: 8, 128>}]} {
    %c0 = arith.constant 0 : index
    %0 = memref.load %arg2[%c0] : memref<1xf32, #tpu.memory_space<smem>>
    %c0_i32 = arith.constant 0 : i32
    %1 = arith.cmpi eq, %arg1, %c0_i32 : i32
    %2 = arith.extui %1 : i1 to i32
    %c0_i32_0 = arith.constant 0 : i32
    %3 = arith.cmpi ne, %2, %c0_i32_0 : i32
    scf.if %3 {
      %c0_9 = arith.constant 0 : index
      %c0_10 = arith.constant 0 : index
      %11 = vector.load %arg3[%c0_9, %c0_10] : memref<8x256xf32, #tpu.memory_space<vmem>>, vector<8x256xf32>
      %12 = arith.mulf %11, %11 : vector<8x256xf32>
      %cst_11 = arith.constant dense<0.000000e+00> : vector<8xf32>
      %13 = vector.multi_reduction <add>, %12, %cst_11 [1] : vector<8x256xf32> to vector<8xf32>
      %14 = vector.shape_cast %13 : vector<8xf32> to vector<8x1xf32>
      %cst_12 = arith.constant 1.000000e-24 : f32
      %15 = vector.broadcast %cst_12 : f32 to vector<8x1xf32>
      %16 = arith.maximumf %14, %15 : vector<8x1xf32>
      %17 = math.rsqrt %16 : vector<8x1xf32>
      %18 = vector.broadcast %0 : f32 to vector<8x1xf32>
      %19 = arith.mulf %17, %18 : vector<8x1xf32>
      %c0_13 = arith.constant 0 : index
      %c0_14 = arith.constant 0 : index
      %20 = vector.load %arg6[%c0_13, %c0_14] : memref<8x1xf32, #tpu.memory_space<vmem>>, vector<8x1xf32>
      tpu.vector_store %arg6[%c0_13, %c0_14], %19 {strides = array<i32>} : memref<8x1xf32, #tpu.memory_space<vmem>>, vector<8x1xf32>,
    } else {
    }
    %c0_1 = arith.constant 0 : index
    %c0_2 = arith.constant 0 : index
    %4 = vector.load %arg6[%c0_1, %c0_2] : memref<8x1xf32, #tpu.memory_space<vmem>>, vector<8x1xf32>
    %c0_3 = arith.constant 0 : index
    %c0_4 = arith.constant 0 : index
    %5 = vector.load %arg3[%c0_3, %c0_4] : memref<8x256xf32, #tpu.memory_space<vmem>>, vector<8x256xf32>
    %c0_5 = arith.constant 0 : index
    %c0_6 = arith.constant 0 : index
    %6 = vector.load %arg4[%c0_5, %c0_6] : memref<256x128xf32, #tpu.memory_space<vmem>>, vector<256x128xf32>
    %cst = arith.constant dense<0.000000e+00> : vector<8x128xf32>
    %7 = tpu.matmul %5, %6, %cst {dimension_numbers = #tpu.dot_dimension_numbers<[1], [0], [0], [1], [0, 0, 1, 1], [], []>} : vector<8x256xf32>, vector<256x128xf32>, vector<8x128xf32> -> vector<8x128xf32>
    %8 = vector.broadcast %4 : vector<8x1xf32> to vector<8x128xf32>
    %9 = arith.mulf %7, %8 : vector<8x128xf32>
    %c0_7 = arith.constant 0 : index
    %c0_8 = arith.constant 0 : index
    %10 = vector.load %arg5[%c0_7, %c0_8] : memref<8x128xf32, #tpu.memory_space<vmem>>, vector<8x128xf32>
    tpu.vector_store %arg5[%c0_7, %c0_8], %9 {strides = array<i32>} : memref<8x128xf32, #tpu.memory_space<vmem>>, vector<8x128xf32>,
    return
  }
  func.func @transform_0(%arg0: i32, %arg1: i32) -> i32 {
    %c0_i32 = arith.constant 0 : i32
    %c0_i32_0 = arith.constant 0 : i32
    return %c0_i32 : i32
  }
  func.func @transform_1(%arg0: i32, %arg1: i32) -> (i32, i32) {
    %c0_i32 = arith.constant 0 : i32
    %c0_i32_0 = arith.constant 0 : i32
    return %arg0, %c0_i32 : i32, i32
  }
  func.func @transform_2(%arg0: i32, %arg1: i32) -> (i32, i32) {
    %c0_i32 = arith.constant 0 : i32
    %c0_i32_0 = arith.constant 0 : i32
    return %c0_i32, %arg1 : i32, i32
  }
  func.func @transform_3(%arg0: i32, %arg1: i32) -> (i32, i32) {
    %c0_i32 = arith.constant 0 : i32
    return %arg0, %arg1 : i32, i32
  }
}

</mosaic_0001>

<bundles_post_ra>
// kernel: tpu_custom_call.1
= control target key start
LH: loop header
LB: loop body
LE: loop exit
PB: predicated region body
PF: predicated region fallthrough
CT: control target
= control target key end

     0   :  { %9 = vsyncpa [#allocation5], 0  ;;  %s413_s0 = inlined_call_operand.<no memory space> [shape: f32[1], index: 0, kind: input, shape index: {}]   ;;  %s414_s1 = inlined_call_operand.hbm [shape: f32[8,256], index: 1, kind: input, shape index: {}]   ;;  %s415_s2 = inlined_call_operand.hbm [shape: f32[256,128], index: 2, kind: input, shape index: {}]   ;;  %s416_s3 = inlined_call_operand.hbm [shape: f32[8,128], index: 3, kind: output, shape index: {}]  }
   0x1   :  { %10 = vsyncpa [#allocation8], 0 }
   0x2   :  { %11 = vsyncpa [#allocation6], 0  ;;  %s336_s12 = smov [#allocation4]   ;;  %s337_s14 = smov [#allocation7]  }
   0x3   :  { %s20_s13 = sshll.u32 %s336_s12, 4  ;;  %s29_s15 = sshll.u32 %s337_s14, 4  ;;  %s21_s13 = int_to_ptr.vmem [resolvable:$true] %s20_s13  ;;  %s362_s15 = int_to_ptr.vmem [resolvable:$true] %s29_s15 }
   0x4   :  { %s264_s18 = scalar_lea.hbm %s414_s1, 256 }
   0x5   :  { %p265_p0 = scmp.ne.s32.totalorder %s414_s1, %s264_s18  ;;  %p268_p1 = scmp.lt.u32.totalorder %s264_s18, %s414_s1 }
   0x7   :  { %p270_p2 = pnand %p268_p1, %p265_p0 }
   0x9   :  { %273 = shalt.err (!%p270_p2)
}
   0xa   :  { %s274_s23 = scalar_lea.vmem %s21_s13, 256  ;;  %p279_p4 = scmp.lt.s32.totalorder %s21_s13, %s21_s13 }
   0xb   :  { %p275_p3 = scmp.ne.s32.totalorder %s21_s13, %s274_s23  ;;  %p280_p5 = scmp.lt.s32.totalorder %s274_s23, %s274_s23 }
   0xd   :  { %p281_p6 = por %p280_p5, %p279_p4 }
   0xf   :  { %p282_p7 = pnand %p281_p6, %p275_p3 }
  0x11   :  { %285 = shalt.err (!%p282_p7)
}
  0x12   :  { %23 = dma.hbm_to_vmem [thread:$0]  %s414_s1, 256, %s21_s13, [#allocation5]  }
  0x13   :  { %s286_s28 = scalar_lea.hbm %s415_s2, 4096 }
  0x14   :  { %p287_p8 = scmp.ne.s32.totalorder %s415_s2, %s286_s28  ;;  %p290_p9 = scmp.lt.u32.totalorder %s286_s28, %s415_s2 }
  0x16   :  { %p292_p10 = pnand %p290_p9, %p287_p8 }
  0x18   :  { %295 = shalt.err (!%p292_p10)
}
  0x19   :  { %s296_s6 = scalar_lea.vmem %s362_s15, 4096  ;;  %p301_p12 = scmp.lt.s32.totalorder %s362_s15, %s362_s15 }
  0x1a   :  { %p297_p11 = scmp.ne.s32.totalorder %s362_s15, %s296_s6  ;;  %p302_p13 = scmp.lt.s32.totalorder %s296_s6, %s296_s6 }
  0x1c   :  { %p303_p0 = por %p302_p13, %p301_p12 }
  0x1e   :  { %p304_p1 = pnand %p303_p0, %p297_p11 }
  0x20   :  { %307 = shalt.err (!%p304_p1)
}
  0x21   :  { %s338_s1 = smov 128   ;;  %s339_s7 = smov 8  }
  0x22   :  { %35 = dma.hbm_to_vmem [thread:$0]  %s415_s2, 4096, %s362_s15, [#allocation8], %s338_s1, %s338_s1, %s339_s7  }
  0x23   :  { %330 = dma.done.wait [#allocation5], 256  }
  0x24   :  { %331 = vsyncadd [#allocation5], 4294967040 }
  0x25   :  { %332 = dma.done.wait [#allocation8], 4096  }
  0x26   :  { %333 = vsyncadd [#allocation8], 4294963200  ;;  %v393_v0 = vld [vmem:[#allocation4] sm:$0xff]  ;;  %v48_v1 = vld [vmem:[#allocation4 + $0x8] sm:$0xff]  ;;  %v340_v53 = vmov 0   ;;  %v56_v56 = vstv %s413_s0  ;;  %vm58_vm0 = vcmask 7168  }
  0x27   :  { %v79_v2 = vld [vmem:[#allocation7 + $0x80] sm:$0xff]  ;;  %v49_v3 = vmul.f32 %v393_v0, %v393_v0  ;;  %v50_v4 = vmul.f32 %v48_v1, %v48_v1  ;;  %v80_v5 = vld [vmem:[#allocation7 + $0x88] sm:$0xff]  ;;  %159 = vmatprep.mubr.f32.mxu0 %v48_v1  ;;  %v81_v10 = vld [vmem:[#allocation7 + $0x90] sm:$0xff]  ;;  %261 = vset.pattern.permute.xlu0 %v340_v53  ;;  %s341_s11 = smov [#allocation9]  }
  0x28   :  { %v63_v6 = vld [vmem:[#allocation7] sm:$0xff]  ;;  %v64_v7 = vld [vmem:[#allocation7 + $0x8] sm:$0xff]  ;;  %v223_v8 = vpack.c.bf16 %v80_v5, %v79_v2  ;;  %v82_v11 = vld [vmem:[#allocation7 + $0x98] sm:$0xff]  ;;  %s178_s12 = sshll.u32 %s341_s11, 4  ;;  %s179_s12 = int_to_ptr.vmem [resolvable:$true] %s178_s12 }
  0x29   :  { %v225_v9 = vpack.c.bf16 %v64_v7, %v63_v6  ;;  %v65_v12 = vld [vmem:[#allocation7 + $0x10] sm:$0xff]  ;;  %v51_v13 = vadd.f32 %v50_v4, %v49_v3  ;;  %v227_v14 = vpack.c.bf16 %v82_v11, %v81_v10  ;;  %v66_v15 = vld [vmem:[#allocation7 + $0x18] sm:$0xff]  ;;  %v83_v16 = vld [vmem:[#allocation7 + $0xa0] sm:$0xff]  ;;  %s308_s13 = scalar_lea.vmem %s179_s12, 128  ;;  %p313_p3 = scmp.lt.s32.totalorder %s179_s12, %s179_s12 }
  0x2a   :  { %v84_v17 = vld [vmem:[#allocation7 + $0xa8] sm:$0xff]  ;;  %224 = vmatprep.subr.bf16.mxu0 %v223_v8  ;;  %v229_v18 = vpack.c.bf16 %v66_v15, %v65_v12  ;;  %v67_v20 = vld [vmem:[#allocation7 + $0x20] sm:$0xff]  ;;  %v85_v22 = vld [vmem:[#allocation7 + $0xb0] sm:$0xff]  ;;  %p309_p2 = scmp.ne.s32.totalorder %s179_s12, %s308_s13  ;;  %p314_p4 = scmp.lt.s32.totalorder %s308_s13, %s308_s13 }
  0x2b   :  { %52 = vadd.xlane.f32.xlu0 %v51_v13  ;;  %226 = vmatpush3.bf16.msra.mxu0 %v225_v9  ;;  %v231_v19 = vpack.c.bf16 %v84_v17, %v83_v16  ;;  %v68_v21 = vld [vmem:[#allocation7 + $0x28] sm:$0xff]  ;;  %v86_v23 = vld [vmem:[#allocation7 + $0xb8] sm:$0xff]  ;;  %v69_v26 = vld [vmem:[#allocation7 + $0x30] sm:$0xff] }
  0x2c   :  { %228 = vmatprep.subr.bf16.mxu0 %v227_v14  ;;  %v233_v24 = vpack.c.bf16 %v68_v21, %v67_v20  ;;  %v235_v25 = vpack.c.bf16 %v86_v23, %v85_v22  ;;  %v70_v27 = vld [vmem:[#allocation7 + $0x38] sm:$0xff]  ;;  %v87_v28 = vld [vmem:[#allocation7 + $0xc0] sm:$0xff]  ;;  %v88_v29 = vld [vmem:[#allocation7 + $0xc8] sm:$0xff]  ;;  %p315_p5 = por %p314_p4, %p313_p3 }
  0x2d   :  { %v237_v30 = vpack.c.bf16 %v70_v27, %v69_v26  ;;  %v239_v31 = vpack.c.bf16 %v88_v29, %v87_v28  ;;  %v71_v32 = vld [vmem:[#allocation7 + $0x40] sm:$0xff]  ;;  %v72_v33 = vld [vmem:[#allocation7 + $0x48] sm:$0xff]  ;;  %v89_v34 = vld [vmem:[#allocation7 + $0xd0] sm:$0xff] }
  0x2e   :  { %v90_v35 = vld [vmem:[#allocation7 + $0xd8] sm:$0xff]  ;;  %v241_v36 = vpack.c.bf16 %v72_v33, %v71_v32  ;;  %v73_v38 = vld [vmem:[#allocation7 + $0x50] sm:$0xff]  ;;  %v91_v40 = vld [vmem:[#allocation7 + $0xe0] sm:$0xff]  ;;  %p316_p6 = pnand %p315_p5, %p309_p2 }
  0x2f   :  { %230 = vmatpush3.bf16.msra.mxu0 %v229_v18  ;;  %v243_v37 = vpack.c.bf16 %v90_v35, %v89_v34  ;;  %v74_v39 = vld [vmem:[#allocation7 + $0x58] sm:$0xff]  ;;  %v92_v41 = vld [vmem:[#allocation7 + $0xe8] sm:$0xff]  ;;  %v75_v44 = vld [vmem:[#allocation7 + $0x60] sm:$0xff] }
  0x30   :  { %232 = vmatprep.subr.bf16.mxu0 %v231_v19  ;;  %v245_v42 = vpack.c.bf16 %v74_v39, %v73_v38  ;;  %v247_v43 = vpack.c.bf16 %v92_v41, %v91_v40  ;;  %v76_v45 = vld [vmem:[#allocation7 + $0x68] sm:$0xff]  ;;  %v93_v46 = vld [vmem:[#allocation7 + $0xf0] sm:$0xff]  ;;  %v94_v47 = vld [vmem:[#allocation7 + $0xf8] sm:$0xff] }
  0x31   :  { %v249_v48 = vpack.c.bf16 %v76_v45, %v75_v44  ;;  %v251_v49 = vpack.c.bf16 %v94_v47, %v93_v46  ;;  %v77_v50 = vld [vmem:[#allocation7 + $0x70] sm:$0xff]  ;;  %v78_v51 = vld [vmem:[#allocation7 + $0x78] sm:$0xff] }
  0x32   :  { %v253_v52 = vpack.c.bf16 %v78_v51, %v77_v50 }
  0x33   :  { %234 = vmatpush3.bf16.msra.mxu0 %v233_v24 }
  0x34   :  { %236 = vmatprep.subr.bf16.mxu0 %v235_v25 }
  0x37   :  { %238 = vmatpush3.bf16.msra.mxu0 %v237_v30 }
  0x38   :  { %240 = vmatprep.subr.bf16.mxu0 %v239_v31 }
  0x3b   :  { %242 = vmatpush3.bf16.msra.mxu0 %v241_v36 }
  0x3c   :  { %244 = vmatprep.subr.bf16.mxu0 %v243_v37 }
  0x3f   :  { %246 = vmatpush3.bf16.msra.mxu0 %v245_v42 }
  0x40   :  { %248 = vmatprep.subr.bf16.mxu0 %v247_v43 }
  0x43   :  { %250 = vmatpush3.bf16.msra.mxu0 %v249_v48 }
  0x44   :  { %252 = vmatprep.subr.bf16.mxu0 %v251_v49 }
  0x47   :  { %254 = vmatpush3.bf16.msra.mxu0 %v253_v52 }
  0x4a   :  { %160 = vmatmul.mubr.f32.vlgmr.msra.gmra.mrb[0].mxu0 %v393_v0 }
  0xb8   :  { %v53_v54 = vpop.xlane.xlu0 %52 }
  0xb9   :  { %v54_v55 = vmax.f32 %v53_v54, 1e-24 }
  0xbb   :  { %262 = vrsqrt.f32 %v54_v55 }
  0xc5   :  { %v263_v57 = vpop.eup %262 }
  0xc6   :  { %v57_v58 = vmul.f32 %v263_v57, %v56_v56 }
  0xc8   :  { %59 = vst.msk [vmem:[#allocation2] sm:$0xff] %vm58_vm0, %v57_v58 }
  0xcf   :  { %v60_v59 = vld [vmem:[#allocation2] sm:$0xff] }
  0xd0   :  { %167 = vperm.xlu0 %261, %v60_v59  }
 0x11d   :  { %v220_v60 = vpop.f32.mrb[0].mxu0 }
 0x11e   :  { %v221_v61 = vpop.f32.mrb[1].mxu0 }
 0x11f   :  { %v222_v62 = vadd.f32 %v221_v61, %v220_v60 }
 0x14f   :  { %v168_v63 = vpop.permute.xlu0 %167 }
 0x150   :  { %v170_v0 = vmul.f32 %v222_v62, %v168_v63 }
 0x152   :  { %171 = vst [vmem:[#allocation9] sm:$0xff] %v170_v0 }
 0x153   :  { %319 = shalt.err (!%p316_p6)
}
 0x154   :  { %s320_s15 = scalar_lea.hbm %s416_s3, 128 }
 0x155   :  { %p321_p7 = scmp.ne.s32.totalorder %s416_s3, %s320_s15  ;;  %p324_p8 = scmp.lt.u32.totalorder %s320_s15, %s416_s3 }
 0x157   :  { %p326_p9 = pnand %p324_p8, %p321_p7 }
 0x159   :  { %329 = shalt.err (!%p326_p9)
}
 0x15a   :  { %181 = dma.vmem_to_hbm [thread:$0]  %s179_s12, 128, %s416_s3, [#allocation6]  }
 0x15b   :  { %334 = dma.done.wait [#allocation6], 128  }
 0x15c   :  { %335 = vsyncadd [#allocation6], 4294967168 }
 0x15d   :  { %185 = vsyncpa [#allocation5], 1 }
 0x15e   :  { %186 = vsyncpa [#allocation8], 1 }
 0x15f   :  { %187 = vsyncpa [#allocation6], 1 }

</bundles_post_ra>
